<compile_context>
chip_gen: v6e
topology: v6e:2x2x1
jax: 0.10.0
libtpu: 0.0.40
codegen_flags: <defaults>
</compile_context>

<pallas_src>
import numpy as np
import jax
import jax.numpy as jnp
from jax import lax
from jax.experimental import pallas as pl
from jax.experimental.pallas import tpu as pltpu


def _round_up(v, m):
    return (v + m - 1) // m * m


def _vmem_capacity_bytes():
    """Queried VMEM capacity with a conservative (v7x) fallback."""
    try:
        info = pltpu.get_tpu_info()
        for name in ("vmem_capacity_bytes", "vmem_size_bytes"):
            cap = getattr(info, name, None)
            if cap:
                return int(cap)
    except Exception:
        pass
    return 64 * 1024 * 1024


# -----------------------------------------------------------------------------
# Fused single-call kernel: whole x resident in VMEM (one read, one write).
# -----------------------------------------------------------------------------
def _fused_kernel(seg_ref, x_ref, inv_ref, w_ref, b_ref, ms_ref, o_ref):
    x = x_ref[...].astype(jnp.float32)                    # [N, D]
    n = x.shape[0]
    bp = inv_ref.shape[0]

    seg = seg_ref[...]                                    # [N, 1] int32
    onehot = (seg == lax.broadcasted_iota(jnp.int32, (n, bp), 1)
              ).astype(jnp.float32)                       # [N, Bp]

    # Segment sums on the MXU: contract the row axis of both operands
    # (no materialized transpose of the one-hot).
    contract_rows = (((0,), (0,)), ((), ()))
    ssum = lax.dot_general(onehot, x, contract_rows,
                           preferred_element_type=jnp.float32)      # [Bp, D]
    ssq = lax.dot_general(onehot, x * x, contract_rows,
                          preferred_element_type=jnp.float32)       # [Bp, D]

    inv = inv_ref[...]                                    # [Bp, 1] (0 for pads)
    w = w_ref[...]                                        # [1, D]
    b = b_ref[...]
    ms = ms_ref[...]

    mean = ssum * inv
    ex2 = ssq * inv
    msm = ms * mean
    # E[(x - ms*mean)^2] = E[x^2] - 2*ms*mean*E[x] + (ms*mean)^2, clamped >= 0.
    var = jnp.maximum(ex2 - 2.0 * msm * mean + msm * msm, 0.0)
    inv_std = lax.rsqrt(var + 1e-6)                       # EUP rsqrt, [Bp, D]

    scale = w * inv_std                                   # out = x*scale - shift
    shift = msm * scale - b

    # Gather per-node scale/shift with one-hot matmuls.
    sc = jnp.dot(onehot, scale, preferred_element_type=jnp.float32)  # [N, D]
    sh = jnp.dot(onehot, shift, preferred_element_type=jnp.float32)  # [N, D]
    o_ref[...] = (x * sc - sh).astype(o_ref.dtype)


# -----------------------------------------------------------------------------
# Tiled two-pass fallback (pass 1: stats -> per-graph scale/shift).
# -----------------------------------------------------------------------------
def _make_stats_kernel(n_valid):
    def kernel(seg_ref, x_ref, inv_ref, w_ref, b_ref, ms_ref,
               scale_ref, shift_ref, sum_ref, sq_ref):
        i = pl.program_id(0)

        @pl.when(i == 0)
        def _init():
            sum_ref[...] = jnp.zeros_like(sum_ref)
            sq_ref[...] = jnp.zeros_like(sq_ref)

        tn = x_ref.shape[0]
        bp = sum_ref.shape[0]

        # Mask rows beyond N (partial last block reads are unspecified).
        row = i * tn + lax.broadcasted_iota(jnp.int32, (tn, 1), 0)
        valid = row < n_valid
        x = jnp.where(valid, x_ref[...].astype(jnp.float32), 0.0)

        seg = seg_ref[...]                                         # [tn, 1]
        onehot = (seg == lax.broadcasted_iota(jnp.int32, (tn, bp), 1)
                  ).astype(jnp.float32)                            # [tn, Bp]

        contract_rows = (((0,), (0,)), ((), ()))
        sum_ref[...] += lax.dot_general(onehot, x, contract_rows,
                                        preferred_element_type=jnp.float32)
        sq_ref[...] += lax.dot_general(onehot, x * x, contract_rows,
                                       preferred_element_type=jnp.float32)

        @pl.when(i == pl.num_programs(0) - 1)
        def _finalize():
            inv = inv_ref[...]                     # [Bp, 1]
            w = w_ref[...]                         # [1, D]
            b = b_ref[...]
            ms = ms_ref[...]
            mean = sum_ref[...] * inv
            ex2 = sq_ref[...] * inv
            msm = ms * mean
            var = jnp.maximum(ex2 - 2.0 * msm * mean + msm * msm, 0.0)
            inv_std = lax.rsqrt(var + 1e-6)
            scale = w * inv_std
            scale_ref[...] = scale
            shift_ref[...] = msm * scale - b

    return kernel


# Pass 2: out = x * scale[g] - shift[g]  (one-hot gather on the MXU).
def _normalize_kernel(seg_ref, x_ref, scale_ref, shift_ref, o_ref):
    tn = x_ref.shape[0]
    bp = scale_ref.shape[0]
    seg = seg_ref[...]
    onehot = (seg == lax.broadcasted_iota(jnp.int32, (tn, bp), 1)
              ).astype(jnp.float32)
    x = x_ref[...].astype(jnp.float32)
    sc = jnp.dot(onehot, scale_ref[...], preferred_element_type=jnp.float32)
    sh = jnp.dot(onehot, shift_ref[...], preferred_element_type=jnp.float32)
    o_ref[...] = (x * sc - sh).astype(o_ref.dtype)


# -----------------------------------------------------------------------------
# Wrapper
# -----------------------------------------------------------------------------
def graph_norm(x, batch_list, weight, bias, mean_scale, *,
               block_n=None, force_two_pass=False):
    """GraphNorm 'gn' branch.

    x          : [N, D] float (f32 or bf16)
    batch_list : int32 [B] nodes per graph (nodes of a graph are contiguous)
    """
    N, D = x.shape
    B = int(batch_list.shape[0])
    f32 = jnp.float32
    out_dtype = x.dtype
    Bp = max(8, _round_up(B, 8))

    # Tiny host-side glue: per-node segment id + per-graph 1/count + params.
    seg_id = jnp.repeat(jnp.arange(B, dtype=jnp.int32), batch_list,
                        total_repeat_length=N).reshape(N, 1)
    inv_cnt = jnp.zeros((Bp, 1), f32).at[:B, 0].set(
        1.0 / batch_list.astype(f32))          # 0 for padded graph rows
    w2 = weight.astype(f32).reshape(1, D)
    b2 = bias.astype(f32).reshape(1, D)
    ms2 = mean_scale.astype(f32).reshape(1, D)

    cap = _vmem_capacity_bytes()

    # ---- fused path: whole x resident in VMEM ----
    est_fused = 4 * (6 * N * D + 2 * N * Bp + 6 * Bp * D + 2 * N + Bp + 3 * D)
    if (not force_two_pass) and est_fused <= int(0.45 * cap):
        return pl.pallas_call(
            _fused_kernel,
            out_shape=jax.ShapeDtypeStruct((N, D), out_dtype),
            compiler_params=pltpu.CompilerParams(
                vmem_limit_bytes=int(0.7 * cap)),
        )(seg_id, x, inv_cnt, w2, b2, ms2)

    # ---- tiled two-pass fallback ----
    if block_n is None:
        target_tile_bytes = 2 * 1024 * 1024           # ~2 MiB of x per tile
        tile_n = _round_up(max(1, target_tile_bytes // (4 * D)), 8)
    else:
        tile_n = _round_up(block_n, 8)
    tile_n = max(8, min(tile_n, _round_up(N, 8)))
    n_tiles = pl.cdiv(N, tile_n)

    vmem_limit = int(min(0.7 * cap,
                         max(32 * 1024 * 1024, 8 * tile_n * D * 4)))

    # Pass 1: per-graph scale / shift.
    scale, shift = pl.pallas_call(
        _make_stats_kernel(N),
        out_shape=(jax.ShapeDtypeStruct((Bp, D), f32),
                   jax.ShapeDtypeStruct((Bp, D), f32)),
        grid_spec=pltpu.PrefetchScalarGridSpec(
            num_scalar_prefetch=0,
            grid=(n_tiles,),
            in_specs=[
                pl.BlockSpec((tile_n, 1), lambda i: (i, 0)),   # seg id
                pl.BlockSpec((tile_n, D), lambda i: (i, 0)),   # x tile
                pl.BlockSpec((Bp, 1), lambda i: (0, 0)),       # 1/count
                pl.BlockSpec((1, D), lambda i: (0, 0)),        # weight
                pl.BlockSpec((1, D), lambda i: (0, 0)),        # bias
                pl.BlockSpec((1, D), lambda i: (0, 0)),        # mean_scale
            ],
            out_specs=[pl.BlockSpec((Bp, D), lambda i: (0, 0)),
                       pl.BlockSpec((Bp, D), lambda i: (0, 0))],
            scratch_shapes=[pltpu.VMEM((Bp, D), f32),          # sum(x)
                            pltpu.VMEM((Bp, D), f32)],         # sum(x^2)
        ),
        compiler_params=pltpu.CompilerParams(
            dimension_semantics=("arbitrary",),
            vmem_limit_bytes=vmem_limit),
    )(seg_id, x, inv_cnt, w2, b2, ms2)

    # Pass 2: normalize.
    return pl.pallas_call(
        _normalize_kernel,
        out_shape=jax.ShapeDtypeStruct((N, D), out_dtype),
        grid_spec=pltpu.PrefetchScalarGridSpec(
            num_scalar_prefetch=0,
            grid=(n_tiles,),
            in_specs=[
                pl.BlockSpec((tile_n, 1), lambda i: (i, 0)),
                pl.BlockSpec((tile_n, D), lambda i: (i, 0)),
                pl.BlockSpec((Bp, D), lambda i: (0, 0)),
                pl.BlockSpec((Bp, D), lambda i: (0, 0)),
            ],
            out_specs=pl.BlockSpec((tile_n, D), lambda i: (i, 0)),
        ),
        compiler_params=pltpu.CompilerParams(
            dimension_semantics=("parallel",),
            vmem_limit_bytes=vmem_limit),
    )(seg_id, x, scale, shift)


def graph_norm_ref(x, batch_list, weight, bias, mean_scale):
    """Pure-JAX reference (mirrors the PyTorch formulation)."""
    N, D = x.shape
    B = batch_list.shape[0]
    seg_id = jnp.repeat(jnp.arange(B), batch_list, total_repeat_length=N)
    cnt = batch_list.astype(jnp.float32).reshape(B, 1)
    xf = x.astype(jnp.float32)
    seg_sum = jax.ops.segment_sum(xf, seg_id, num_segments=B)
    mean = seg_sum / cnt
    sub = xf - mean[seg_id] * mean_scale
    seg_sq = jax.ops.segment_sum(sub * sub, seg_id, num_segments=B)
    std = jnp.sqrt(seg_sq / cnt + 1e-6)
    return weight * sub / std[seg_id] + bias


if __name__ == "__main__":
    key = jax.random.PRNGKey(0)
    k1, k2 = jax.random.split(key)

    # --- small case (typical hidden size, fused path) ---
    hidden_dim = 32
    batch_list = jnp.array([3, 2, 3], dtype=jnp.int32)      # 3 graphs, 8 nodes
    N = int(batch_list.sum())
    x = jax.random.normal(k1, (N, hidden_dim), dtype=jnp.float32)
    weight = jnp.ones((hidden_dim,), dtype=jnp.float32)
    bias = jnp.zeros((hidden_dim,), dtype=jnp.float32)
    mean_scale = jnp.ones((hidden_dim,), dtype=jnp.float32)

    out = jax.block_until_ready(graph_norm(x, batch_list, weight, bias, mean_scale))
    ref = graph_norm_ref(x, batch_list, weight, bias, mean_scale)
    assert np.allclose(np.asarray(out), np.asarray(ref), atol=1e-4, rtol=1e-4)

    # --- larger multi-graph case (still fused path) ---
    hidden_dim2 = 64
    batch_list2 = jnp.array([300, 250, 150, 400, 100], dtype=jnp.int32)
    N2 = int(batch_list2.sum())
    x2 = jax.random.normal(k2, (N2, hidden_dim2), dtype=jnp.float32)
    w2 = 0.5 + 0.01 * jnp.arange(hidden_dim2, dtype=jnp.float32)
    b2 = 0.1 * jnp.ones((hidden_dim2,), dtype=jnp.float32)
    ms2 = 0.9 * jnp.ones((hidden_dim2,), dtype=jnp.float32)

    out2 = jax.block_until_ready(graph_norm(x2, batch_list2, w2, b2, ms2))
    ref2 = graph_norm_ref(x2, batch_list2, w2, b2, ms2)
    assert np.allclose(np.asarray(out2), np.asarray(ref2), atol=1e-4, rtol=1e-4)

    # --- force the tiled two-pass fallback (exercises grid / accumulation /
    #     partial last block: 1200 = 4*256 + 176) ---
    out3 = jax.block_until_ready(
        graph_norm(x2, batch_list2, w2, b2, ms2,
                   force_two_pass=True, block_n=256))
    assert np.allclose(np.asarray(out3), np.asarray(ref2), atol=1e-4, rtol=1e-4)

    print("KERNEL_OK")
</pallas_src>

<mosaic_0001>
module attributes {stable_mosaic.version = 11 : i64} {
  func.func @_fused_kernel(%arg0: memref<8x1xi32, #tpu.memory_space<vmem>>, %arg1: memref<8x32xf32, #tpu.memory_space<vmem>>, %arg2: memref<8x1xf32, #tpu.memory_space<vmem>>, %arg3: memref<1x32xf32, #tpu.memory_space<vmem>>, %arg4: memref<1x32xf32, #tpu.memory_space<vmem>>, %arg5: memref<1x32xf32, #tpu.memory_space<vmem>>, %arg6: memref<8x32xf32, #tpu.memory_space<vmem>>) attributes {dimension_semantics = [], scalar_prefetch = 0 : i64, scratch_operands = 0 : i64, tpu.core_type = #tpu.core_type<tc>} {
    %c0 = arith.constant 0 : index
    %c0_0 = arith.constant 0 : index
    %0 = vector.load %arg1[%c0, %c0_0] : memref<8x32xf32, #tpu.memory_space<vmem>>, vector<8x32xf32>
    %c0_1 = arith.constant 0 : index
    %c0_2 = arith.constant 0 : index
    %1 = vector.load %arg0[%c0_1, %c0_2] : memref<8x1xi32, #tpu.memory_space<vmem>>, vector<8x1xi32>
    %2 = tpu.iota {dimensions = array<i32: 1>} : vector<8x8xi32>
    %3 = vector.broadcast %1 : vector<8x1xi32> to vector<8x8xi32>
    %4 = arith.cmpi eq, %3, %2 : vector<8x8xi32>
    %5 = arith.extui %4 : vector<8x8xi1> to vector<8x8xi32>
    %6 = arith.sitofp %5 : vector<8x8xi32> to vector<8x8xf32>
    %cst = arith.constant dense<0.000000e+00> : vector<8x32xf32>
    %7 = tpu.matmul %6, %0, %cst {dimension_numbers = #tpu.dot_dimension_numbers<[0], [0], [1], [1], [0, 1, 1, 1], [], []>} : vector<8x8xf32>, vector<8x32xf32>, vector<8x32xf32> -> vector<8x32xf32>
    %8 = arith.mulf %0, %0 : vector<8x32xf32>
    %cst_3 = arith.constant dense<0.000000e+00> : vector<8x32xf32>
    %9 = tpu.matmul %6, %8, %cst_3 {dimension_numbers = #tpu.dot_dimension_numbers<[0], [0], [1], [1], [0, 1, 1, 1], [], []>} : vector<8x8xf32>, vector<8x32xf32>, vector<8x32xf32> -> vector<8x32xf32>
    %c0_4 = arith.constant 0 : index
    %c0_5 = arith.constant 0 : index
    %10 = vector.load %arg2[%c0_4, %c0_5] : memref<8x1xf32, #tpu.memory_space<vmem>>, vector<8x1xf32>
    %c0_6 = arith.constant 0 : index
    %c0_7 = arith.constant 0 : index
    %11 = vector.load %arg3[%c0_6, %c0_7] : memref<1x32xf32, #tpu.memory_space<vmem>>, vector<1x32xf32>
    %c0_8 = arith.constant 0 : index
    %c0_9 = arith.constant 0 : index
    %12 = vector.load %arg4[%c0_8, %c0_9] : memref<1x32xf32, #tpu.memory_space<vmem>>, vector<1x32xf32>
    %c0_10 = arith.constant 0 : index
    %c0_11 = arith.constant 0 : index
    %13 = vector.load %arg5[%c0_10, %c0_11] : memref<1x32xf32, #tpu.memory_space<vmem>>, vector<1x32xf32>
    %14 = vector.broadcast %10 : vector<8x1xf32> to vector<8x32xf32>
    %15 = arith.mulf %7, %14 : vector<8x32xf32>
    %16 = vector.broadcast %10 : vector<8x1xf32> to vector<8x32xf32>
    %17 = arith.mulf %9, %16 : vector<8x32xf32>
    %18 = vector.broadcast %13 : vector<1x32xf32> to vector<8x32xf32>
    %19 = arith.mulf %18, %15 : vector<8x32xf32>
    %cst_12 = arith.constant 2.000000e+00 : f32
    %20 = vector.broadcast %cst_12 : f32 to vector<8x32xf32>
    %21 = arith.mulf %20, %19 : vector<8x32xf32>
    %22 = arith.mulf %21, %15 : vector<8x32xf32>
    %23 = arith.subf %17, %22 : vector<8x32xf32>
    %24 = arith.mulf %19, %19 : vector<8x32xf32>
    %25 = arith.addf %23, %24 : vector<8x32xf32>
    %cst_13 = arith.constant 0.000000e+00 : f32
    %26 = vector.broadcast %cst_13 : f32 to vector<8x32xf32>
    %27 = arith.maximumf %25, %26 : vector<8x32xf32>
    %cst_14 = arith.constant 9.99999997E-7 : f32
    %28 = vector.broadcast %cst_14 : f32 to vector<8x32xf32>
    %29 = arith.addf %27, %28 : vector<8x32xf32>
    %30 = math.rsqrt %29 : vector<8x32xf32>
    %31 = vector.broadcast %11 : vector<1x32xf32> to vector<8x32xf32>
    %32 = arith.mulf %31, %30 : vector<8x32xf32>
    %33 = arith.mulf %19, %32 : vector<8x32xf32>
    %34 = vector.broadcast %12 : vector<1x32xf32> to vector<8x32xf32>
    %35 = arith.subf %33, %34 : vector<8x32xf32>
    %cst_15 = arith.constant dense<0.000000e+00> : vector<8x32xf32>
    %36 = tpu.matmul %6, %32, %cst_15 {dimension_numbers = #tpu.dot_dimension_numbers<[1], [0], [0], [1], [0, 0, 1, 1], [], []>} : vector<8x8xf32>, vector<8x32xf32>, vector<8x32xf32> -> vector<8x32xf32>
    %cst_16 = arith.constant dense<0.000000e+00> : vector<8x32xf32>
    %37 = tpu.matmul %6, %35, %cst_16 {dimension_numbers = #tpu.dot_dimension_numbers<[1], [0], [0], [1], [0, 0, 1, 1], [], []>} : vector<8x8xf32>, vector<8x32xf32>, vector<8x32xf32> -> vector<8x32xf32>
    %38 = arith.mulf %0, %36 : vector<8x32xf32>
    %39 = arith.subf %38, %37 : vector<8x32xf32>
    %c0_17 = arith.constant 0 : index
    %c0_18 = arith.constant 0 : index
    %40 = vector.load %arg6[%c0_17, %c0_18] : memref<8x32xf32, #tpu.memory_space<vmem>>, vector<8x32xf32>
    tpu.vector_store %arg6[%c0_17, %c0_18], %39 {strides = array<i32>} : memref<8x32xf32, #tpu.memory_space<vmem>>, vector<8x32xf32>,
    return
  }
}

</mosaic_0001>

<bundles_post_ra>
// kernel: tpu_custom_call.1
= control target key start
LH: loop header
LB: loop body
LE: loop exit
PB: predicated region body
PF: predicated region fallthrough
CT: control target
= control target key end

     0   :  { %s547_s0 = inlined_call_operand.vmem [shape: s32[8,1], index: 0, kind: input, shape index: {}]   ;;  %s548_s1 = inlined_call_operand.vmem [shape: f32[8,32], index: 1, kind: input, shape index: {}]   ;;  %s549_s2 = inlined_call_operand.vmem [shape: f32[8,1], index: 2, kind: input, shape index: {}]   ;;  %s550_s3 = inlined_call_operand.vmem [shape: f32[1,32], index: 3, kind: input, shape index: {}]   ;;  %s551_s4 = inlined_call_operand.vmem [shape: f32[1,32], index: 4, kind: input, shape index: {}]   ;;  %s552_s5 = inlined_call_operand.vmem [shape: f32[1,32], index: 5, kind: input, shape index: {}]   ;;  %s553_s6 = inlined_call_operand.hbm [shape: f32[8,32], index: 6, kind: output, shape index: {}]  }
   0x1   :  { %v25_v0 = vld [vmem:[%s547_s0] sm:$0xff] }
   0x2   :  { %11 = vsyncpa [#allocation3], 0  ;;  %v479_v1 = vmov 0   ;;  %v480_v2 = vmov 0.0   ;;  %vm481_vm0 = vmmov 0   ;;  %v26_v3 = vlaneseq  ;;  %v24_v4 = vld [vmem:[%s548_s1] sm:$0xff] }
   0x3   :  { %453 = vset.pattern.permute.xlu0 %v479_v1  ;;  %429 = vmatprep.subr.mxu0 %v480_v2  ;;  %v140_v6 = vmul.f32 %v24_v4, %v24_v4  ;;  %v211_v8 = vld [vmem:[%s549_s2] sm:$0xff]  ;;  %vm66_vm2 = vcmask 64512   ;;  %s482_s29 = smov [#allocation2]   ;;  %vm397_vm3 = vcmask 261120  }
   0x4   :  { %29 = vperm.xlu0 %453, %v25_v0   ;;  %434 = vmatprep.subr.mxu1 %v480_v2  ;;  %v27_v5 = vand.u32 127, %v26_v3  ;;  %v416_v13 = vld [vmem:[%s552_s5] ss:$0 sm:$0xff]  ;;  %s405_s30 = sshll.u32 %s482_s29, 4  ;;  %s406_s30 = int_to_ptr.vmem [resolvable:$true] %s405_s30 }
   0x5   :  { %431 = vmatprep.mubr.msk.f32.mxu0 %vm481_vm0, %v480_v2  ;;  %436 = vmatprep.mubr.msk.f32.mxu1 %vm481_vm0, %v480_v2  ;;  %v417_v27 = vld [vmem:[%s550_s3] ss:$0 sm:$0xff]  ;;  %s457_s3 = scalar_lea.vmem %s406_s30, 128  ;;  %p462_p1 = scmp.lt.s32.totalorder %s406_s30, %s406_s30 }
   0x6   :  { %454 = vset.pattern.permute.xlu1 %v479_v1  ;;  %430 = vmatpush3.msra.mxu0 %v24_v4  ;;  %v418_v30 = vld [vmem:[%s551_s4] ss:$0 sm:$0xff]  ;;  %p458_p0 = scmp.ne.s32.totalorder %s406_s30, %s457_s3  ;;  %p463_p2 = scmp.lt.s32.totalorder %s457_s3, %s457_s3 }
   0x7   :  { %439 = vmatprep.subr.mxu0 %v480_v2  ;;  %435 = vmatpush3.msra.mxu1 %v140_v6 }
   0x8   :  { %444 = vmatprep.subr.mxu1 %v480_v2  ;;  %217 = vperm.xlu1 %454, %v211_v8   ;;  %p464_p3 = por %p463_p2, %p462_p1 }
   0xa   :  { %p465_p4 = pnand %p464_p3, %p458_p0 }
  0x7f   :  { %v30_v7 = vpop.permute.xlu0 %29 }
  0x80   :  { %vm31_vm1 = vcmp.eq.s32.totalorder %v30_v7, %v27_v5 }
  0x81   :  { %v413_v9 = vsel %vm31_vm1, 1.0, %v480_v2 }
  0x82   :  { %34 = vxpose.xlu0.b32.start.end [1/1] (short) (narrow) %v413_v9, 8 }
  0x83   :  { %v218_v11 = vpop.permute.xlu1 %217 }
  0xfe   :  { %v50_v10 = vpop.trf.xlu0 }
  0xff   :  { %432 = vmatmul.mubr.msk.f32.vlgmr.msra.gmra.mxu0 %vm66_vm2, %v50_v10  ;;  %437 = vmatmul.mubr.msk.f32.vlgmr.msra.gmra.mxu1 %vm66_vm2, %v50_v10 }
 0x100   :  { %441 = vmatprep.mubr.msk.f32.mxu0 %vm481_vm0, %v480_v2  ;;  %446 = vmatprep.mubr.msk.f32.mxu1 %vm481_vm0, %v480_v2 }
 0x1bf   :  { %v136_v12 = vpop.f32.mrf.mxu0  ;;  %v207_v14 = vpop.f32.mrf.mxu1 }
 0x1c0   :  { %v220_v15 = vmul.f32 %v218_v11, %v136_v12  ;;  %v221_v21 = vmul.f32 %v218_v11, %v207_v14 }
 0x1c1   :  { %v433_v16 = vpop.f32.mrf.mxu0  ;;  %v438_v17 = vpop.f32.mrf.mxu1 }
 0x1c2   :  { %v228_v18 = vmul.f32 %v416_v13, %v220_v15 }
 0x1c4   :  { %v229_v19 = vmul.f32 2.0, %v228_v18  ;;  %v232_v23 = vmul.f32 %v228_v18, %v228_v18 }
 0x1c6   :  { %v230_v20 = vmul.f32 %v229_v19, %v220_v15 }
 0x1c8   :  { %v231_v22 = vsub.f32 %v221_v21, %v230_v20 }
 0x1ca   :  { %v233_v24 = vadd.f32 %v232_v23, %v231_v22 }
 0x1cc   :  { %v234_v25 = vmax.f32 %v233_v24, 0.0 }
 0x1ce   :  { %v235_v26 = vadd.f32 1e-06, %v234_v25 }
 0x1d0   :  { %455 = vrsqrt.f32 %v235_v26 }
 0x1dd   :  { %v456_v28 = vpop.eup %455 }
 0x1de   :  { %v243_v29 = vmul.f32 %v456_v28, %v417_v27 }
 0x1e0   :  { %440 = vmatpush3.msra.mxu0 %v243_v29  ;;  %v244_v31 = vmul.f32 %v243_v29, %v228_v18 }
 0x1e1   :  { %442 = vmatmul.mubr.msk.f32.vlgmr.msra.gmra.mxu0 %vm66_vm2, %v413_v9 }
 0x1e2   :  { %v251_v32 = vsub.f32 %v244_v31, %v418_v30 }
 0x1e4   :  { %445 = vmatpush3.msra.mxu1 %v251_v32 }
 0x1e5   :  { %447 = vmatmul.mubr.msk.f32.vlgmr.msra.gmra.mxu1 %vm66_vm2, %v413_v9 }
 0x2a1   :  { %v321_v33 = vpop.f32.mrf.mxu0 }
 0x2a2   :  { %v395_v35 = vmul.f32 %v321_v33, %v24_v4 }
 0x2a3   :  { %v443_v34 = vpop.f32.mrf.mxu0 }
 0x2a5   :  { %v391_v36 = vpop.f32.mrf.mxu1 }
 0x2a6   :  { %v396_v37 = vsub.f32 %v395_v35, %v391_v36 }
 0x2a7   :  { %v448_v38 = vpop.f32.mrf.mxu1 }
 0x2a8   :  { %398 = vst.msk [vmem:[#allocation2] sm:$0xff] %vm397_vm3, %v396_v37 }
 0x2a9   :  { %468 = shalt.err (!%p465_p4)
}
 0x2aa   :  { %408 = dma.vmem_to_hbm [thread:$0]  %s406_s30, 128, %s553_s6, [#allocation3]  }
 0x2ab   :  { %477 = dma.done.wait [#allocation3], 128  }
 0x2ac   :  { %478 = vsyncadd [#allocation3], 4294967168 }
 0x2ad   :  { %412 = vsyncpa [#allocation3], 1 }

</bundles_post_ra>
